<compile_context>
chip_gen: v5e
topology: v5e:2x2
jax: 0.10.0
libtpu: 0.0.40
codegen_flags: <defaults>
</compile_context>

<pallas_src>
import functools

import jax
import jax.numpy as jnp
from jax import lax
from jax.experimental import pallas as pl
from jax.experimental.pallas import tpu as pltpu


# ---------------------------------------------------------------------------
# Kernel
# ---------------------------------------------------------------------------
def dl1_loss_kernel(logits_ref, tgt_ref, puv_ref, uv_ref, psn_ref, sn_ref,
                    out_ref, acc_ref, *, inv_n_pix, inv_n_uv, inv_n_sn):
    p = pl.program_id(2)

    @pl.when(p == 0)
    def _init():
        acc_ref[...] = jnp.zeros_like(acc_ref)

    # ---- Cross-entropy on one pixel tile: logits (C, T), pixels lane-dense ----
    x = logits_ref[0].astype(jnp.float32)                      # (C, T)
    t = tgt_ref[0]                                             # (1, T) int32
    m = jnp.max(x, axis=0, keepdims=True)                      # (1, T)
    lse = m + jnp.log(jnp.sum(jnp.exp(x - m), axis=0, keepdims=True))  # (1, T)

    # Vectorized target-logit pick (stays in the natural (C, T) vreg layout).
    # NOTE: out-of-range target ids silently contribute 0 (default torch CE has
    # no ignore_index configured; valid class ids are assumed).
    ids = lax.broadcasted_iota(jnp.int32, x.shape, 0)          # (C, T)
    picked = jnp.sum(jnp.where(ids == t, x, 0.0), axis=0, keepdims=True)  # (1, T)
    ce_part = jnp.sum(lse - picked, axis=1, keepdims=True)     # (1, 1)

    # ---- L1 partial sums: refs are lane-dense 2-D slabs (shape-agnostic) ----
    duv = jnp.abs(puv_ref[0].astype(jnp.float32) - uv_ref[0].astype(jnp.float32))
    uv_part = jnp.sum(jnp.sum(duv, axis=1, keepdims=True), axis=0, keepdims=True)
    dsn = jnp.abs(psn_ref[0].astype(jnp.float32) - sn_ref[0].astype(jnp.float32))
    sn_part = jnp.sum(jnp.sum(dsn, axis=1, keepdims=True), axis=0, keepdims=True)

    # Scale by GLOBAL counts so summing per-(split,batch) partials gives the
    # exact means.
    acc_ref[...] += (ce_part * inv_n_pix
                     + uv_part * (5.0 * inv_n_uv)
                     + sn_part * (2.0 * inv_n_sn))

    @pl.when(p == pl.num_programs(2) - 1)
    def _finalize():
        # Lane-dense (1,1,128) store of the partial.
        out_ref[...] = jnp.broadcast_to(acc_ref[...], out_ref.shape)


# ---------------------------------------------------------------------------
# Padding-aware tile / layout selection
# ---------------------------------------------------------------------------
_VMEM_INPUT_BUDGET = 28 * 1024 * 1024   # padded, double-buffered input bytes
_VMEM_LIMIT_BYTES = 48 * 1024 * 1024    # scoped limit (safe on v7x's 64 MiB)


def _round_up(x, m):
    return ((x + m - 1) // m) * m


def _step_bytes(tile_p, c_cls, c_uv, c_sn, packed):
    """Padded, double-buffered VMEM bytes of one pipeline step's inputs."""
    b = _round_up(c_cls, 8) * tile_p * 4        # logits block (1, C, tile_p)
    b += 8 * tile_p * 4                         # int32 targets block (1, 1, tile_p)
    for c in (c_uv, c_uv, c_sn, c_sn):
        if packed:
            rows = (c * tile_p) // 128          # (1, rows, 128) slab tile
            b += _round_up(rows, 8) * 128 * 4
        else:
            b += _round_up(c, 8) * tile_p * 4   # (1, c, tile_p) tile
    return 2 * b                                # double buffering


def _pick_layout(hw, c_cls, c_uv, c_sn, budget):
    """Return (packed, tile_p, num_tiles).

    Largest pixel tile that divides H*W, keeps the padded double-buffered
    footprint under budget, and (when tiled) keeps every packed slab's row
    tile a multiple of 8 sublanes.
    """
    if hw % 128 == 0:
        for t in range(hw, 127, -128):
            if hw % t:
                continue
            if _step_bytes(t, c_cls, c_uv, c_sn, packed=True) > budget:
                continue
            if t == hw:
                return True, t, 1               # full-extent blocks, always legal
            if all((c * t) % (8 * 128) == 0 for c in (c_uv, c_sn)):
                return True, t, hw // t
    # Unpacked fallback (keeps the (c, pixels) layout; sublane-padded but legal).
    start = hw - (hw % 128)
    for t in range(start, 127, -128):
        if hw % t == 0 and _step_bytes(t, c_cls, c_uv, c_sn, packed=False) <= budget:
            return False, t, hw // t
    # TODO(synk): masked ragged last tile when H*W has no usable 128-multiple
    # divisor; for now fall back to one (possibly lane-sparse) full block.
    return False, hw, 1


# ---------------------------------------------------------------------------
# Wrapper
# ---------------------------------------------------------------------------
def dl1_combine(pred_sn, pred_oi, pred_uv, sn, oi, uv):
    B, C, H, W = pred_oi.shape
    HW = H * W
    c_uv = pred_uv.shape[1]
    c_sn = pred_sn.shape[1]

    packed, tile_p, num_tiles = _pick_layout(HW, C, c_uv, c_sn, _VMEM_INPUT_BUDGET)

    # Extra 'parallel' split of the pixel-tile range: gives v7x's second
    # TensorCore work when B is odd/1; size-1 (free) axis otherwise.
    n_split = 2 if (num_tiles % 2 == 0 and num_tiles >= 2 and B % 2 == 1) else 1
    tiles_per_seg = num_tiles // n_split

    # Free, contiguous reshapes only -- no transpose, no extra HBM pass.
    logits = pred_oi.reshape(B, C, HW)
    tgt = oi.reshape(B, 1, HW).astype(jnp.int32)

    if packed:
        # Lane-dense (rows, 128) slabs: no sublane padding for tiny channel
        # dims, one contiguous DMA per stream per step.
        puv = pred_uv.reshape(B, (c_uv * HW) // 128, 128)
        tuv = uv.reshape(B, (c_uv * HW) // 128, 128)
        psn = pred_sn.reshape(B, (c_sn * HW) // 128, 128)
        tsn = sn.reshape(B, (c_sn * HW) // 128, 128)
        r_uv = (c_uv * tile_p) // 128
        r_sn = (c_sn * tile_p) // 128
        uv_spec = pl.BlockSpec((1, r_uv, 128),
                               lambda s, b, p: (b, s * tiles_per_seg + p, 0))
        sn_spec = pl.BlockSpec((1, r_sn, 128),
                               lambda s, b, p: (b, s * tiles_per_seg + p, 0))
    else:
        puv = pred_uv.reshape(B, c_uv, HW)
        tuv = uv.reshape(B, c_uv, HW)
        psn = pred_sn.reshape(B, c_sn, HW)
        tsn = sn.reshape(B, c_sn, HW)
        uv_spec = pl.BlockSpec((1, c_uv, tile_p),
                               lambda s, b, p: (b, 0, s * tiles_per_seg + p))
        sn_spec = pl.BlockSpec((1, c_sn, tile_p),
                               lambda s, b, p: (b, 0, s * tiles_per_seg + p))

    pix_spec = pl.BlockSpec((1, C, tile_p),
                            lambda s, b, p: (b, 0, s * tiles_per_seg + p))
    tgt_spec = pl.BlockSpec((1, 1, tile_p),
                            lambda s, b, p: (b, 0, s * tiles_per_seg + p))
    out_spec = pl.BlockSpec((1, 1, 128), lambda s, b, p: (s * B + b, 0, 0))

    kernel = functools.partial(
        dl1_loss_kernel,
        inv_n_pix=1.0 / (B * HW),
        inv_n_uv=1.0 / (B * c_uv * HW),
        inv_n_sn=1.0 / (B * c_sn * HW),
    )

    partials = pl.pallas_call(
        kernel,
        out_shape=jax.ShapeDtypeStruct((n_split * B, 1, 128), jnp.float32),
        grid_spec=pltpu.PrefetchScalarGridSpec(
            num_scalar_prefetch=0,
            grid=(n_split, B, tiles_per_seg),
            in_specs=[pix_spec, tgt_spec, uv_spec, uv_spec, sn_spec, sn_spec],
            out_specs=out_spec,
            scratch_shapes=[pltpu.VMEM((1, 1), jnp.float32)],
        ),
        compiler_params=pltpu.CompilerParams(
            dimension_semantics=("parallel", "parallel", "arbitrary"),
            vmem_limit_bytes=_VMEM_LIMIT_BYTES,
        ),
    )(logits, tgt, puv, tuv, psn, tsn)

    # Tiny final reduction over per-(split,batch) partials (already globally
    # normalized).
    return jnp.sum(partials[:, 0, 0])


# ---------------------------------------------------------------------------
# Pure-JAX reference (mirrors torch.nn.CrossEntropyLoss / L1Loss, mean)
# ---------------------------------------------------------------------------
def _reference(pred_sn, pred_oi, pred_uv, sn, oi, uv):
    logits = jnp.transpose(pred_oi, (0, 2, 3, 1)).reshape(-1, pred_oi.shape[1])
    tgt = oi.reshape(-1)
    logz = jax.scipy.special.logsumexp(logits, axis=-1)
    picked = jnp.take_along_axis(logits, tgt[:, None], axis=-1)[:, 0]
    ce = jnp.mean(logz - picked)
    l1_uv = jnp.mean(jnp.abs(pred_uv - uv))
    l1_sn = jnp.mean(jnp.abs(pred_sn - sn))
    return ce + 5.0 * l1_uv + 2.0 * l1_sn


if __name__ == "__main__":
    key = jax.random.PRNGKey(0)
    k1, k2, k3, k4, k5, k6 = jax.random.split(key, 6)

    B, C, H, W = 2, 4, 16, 16
    pred_sn = jax.random.normal(k1, (B, 3, H, W), dtype=jnp.float32)
    sn      = jax.random.normal(k2, (B, 3, H, W), dtype=jnp.float32)
    pred_oi = jax.random.normal(k3, (B, C, H, W), dtype=jnp.float32)
    oi      = jax.random.randint(k4, (B, H, W), 0, C, dtype=jnp.int32)
    pred_uv = jax.random.normal(k5, (B, 2, H, W), dtype=jnp.float32)
    uv      = jax.random.normal(k6, (B, 2, H, W), dtype=jnp.float32)

    loss = dl1_combine(pred_sn, pred_oi, pred_uv, sn, oi, uv)
    loss = jax.block_until_ready(loss)

    ref = _reference(pred_sn, pred_oi, pred_uv, sn, oi, uv)
    assert jnp.allclose(loss, ref, rtol=1e-5, atol=1e-5), (loss, ref)

    print("KERNEL_OK")
</pallas_src>

<mosaic_0001>
module attributes {stable_mosaic.version = 11 : i64} {
  func.func @dl1_loss_kernel(%arg0: i32, %arg1: i32, %arg2: i32, %arg3: memref<1x4x256xf32, #tpu.memory_space<vmem>>, %arg4: memref<1x1x256xi32, #tpu.memory_space<vmem>>, %arg5: memref<1x4x128xf32, #tpu.memory_space<vmem>>, %arg6: memref<1x4x128xf32, #tpu.memory_space<vmem>>, %arg7: memref<1x6x128xf32, #tpu.memory_space<vmem>>, %arg8: memref<1x6x128xf32, #tpu.memory_space<vmem>>, %arg9: memref<1x1x128xf32, #tpu.memory_space<vmem>>, %arg10: memref<1x1xf32, #tpu.memory_space<vmem>>) attributes {dimension_semantics = [#tpu.dimension_semantics<parallel>, #tpu.dimension_semantics<parallel>, #tpu.dimension_semantics<arbitrary>], iteration_bounds = array<i64: 1, 2, 1>, scalar_prefetch = 0 : i64, scratch_operands = 1 : i64, tpu.core_type = #tpu.core_type<tc>, window_params = [{transform_indices = @transform_0, window_bounds = array<i64: 1, 4, 256>}, {transform_indices = @transform_1, window_bounds = array<i64: 1, 1, 256>}, {transform_indices = @transform_2, window_bounds = array<i64: 1, 4, 128>}, {transform_indices = @transform_3, window_bounds = array<i64: 1, 4, 128>}, {transform_indices = @transform_4, window_bounds = array<i64: 1, 6, 128>}, {transform_indices = @transform_5, window_bounds = array<i64: 1, 6, 128>}, {transform_indices = @transform_6, window_bounds = array<i64: 1, 1, 128>}]} {
    %c0_i32 = arith.constant 0 : i32
    %0 = arith.cmpi eq, %arg2, %c0_i32 : i32
    %1 = arith.extui %0 : i1 to i32
    %c0_i32_0 = arith.constant 0 : i32
    %2 = arith.cmpi ne, %1, %c0_i32_0 : i32
    scf.if %2 {
      %cst_35 = arith.constant 0.000000e+00 : f32
      %60 = vector.broadcast %cst_35 : f32 to vector<1x1xf32>
      %c0_36 = arith.constant 0 : index
      %c0_37 = arith.constant 0 : index
      %61 = vector.load %arg10[%c0_36, %c0_37] : memref<1x1xf32, #tpu.memory_space<vmem>>, vector<1x1xf32>
      tpu.vector_store %arg10[%c0_36, %c0_37], %60 {strides = array<i32>} : memref<1x1xf32, #tpu.memory_space<vmem>>, vector<1x1xf32>,
    } else {
    }
    %c0 = arith.constant 0 : index
    %c0_1 = arith.constant 0 : index
    %c0_2 = arith.constant 0 : index
    %3 = vector.load %arg3[%c0, %c0_1, %c0_2] : memref<1x4x256xf32, #tpu.memory_space<vmem>>, vector<1x4x256xf32>
    %4 = vector.shape_cast %3 : vector<1x4x256xf32> to vector<4x256xf32>
    %c0_3 = arith.constant 0 : index
    %c0_4 = arith.constant 0 : index
    %c0_5 = arith.constant 0 : index
    %5 = vector.load %arg4[%c0_3, %c0_4, %c0_5] : memref<1x1x256xi32, #tpu.memory_space<vmem>>, vector<1x1x256xi32>
    %6 = vector.shape_cast %5 : vector<1x1x256xi32> to vector<1x256xi32>
    %cst = arith.constant dense<0xFF800000> : vector<256xf32>
    %7 = vector.multi_reduction <maximumf>, %4, %cst [0] : vector<4x256xf32> to vector<256xf32>
    %8 = vector.shape_cast %7 : vector<256xf32> to vector<1x256xf32>
    %9 = vector.broadcast %8 : vector<1x256xf32> to vector<4x256xf32>
    %10 = arith.subf %4, %9 : vector<4x256xf32>
    %11 = math.exp %10 : vector<4x256xf32>
    %cst_6 = arith.constant dense<0.000000e+00> : vector<256xf32>
    %12 = vector.multi_reduction <add>, %11, %cst_6 [0] : vector<4x256xf32> to vector<256xf32>
    %13 = vector.shape_cast %12 : vector<256xf32> to vector<1x256xf32>
    %14 = math.log %13 : vector<1x256xf32>
    %15 = arith.addf %8, %14 : vector<1x256xf32>
    %16 = tpu.iota {dimensions = array<i32: 0>} : vector<4x256xi32>
    %17 = vector.broadcast %6 : vector<1x256xi32> to vector<4x256xi32>
    %18 = arith.cmpi eq, %16, %17 : vector<4x256xi32>
    %cst_7 = arith.constant 0.000000e+00 : f32
    %19 = vector.broadcast %cst_7 : f32 to vector<4x256xf32>
    %20 = arith.select %18, %4, %19 : vector<4x256xi1>, vector<4x256xf32>
    %cst_8 = arith.constant dense<0.000000e+00> : vector<256xf32>
    %21 = vector.multi_reduction <add>, %20, %cst_8 [0] : vector<4x256xf32> to vector<256xf32>
    %22 = vector.shape_cast %21 : vector<256xf32> to vector<1x256xf32>
    %23 = arith.subf %15, %22 : vector<1x256xf32>
    %cst_9 = arith.constant dense<0.000000e+00> : vector<1xf32>
    %24 = vector.multi_reduction <add>, %23, %cst_9 [1] : vector<1x256xf32> to vector<1xf32>
    %25 = vector.shape_cast %24 : vector<1xf32> to vector<1x1xf32>
    %c0_10 = arith.constant 0 : index
    %c0_11 = arith.constant 0 : index
    %c0_12 = arith.constant 0 : index
    %26 = vector.load %arg5[%c0_10, %c0_11, %c0_12] : memref<1x4x128xf32, #tpu.memory_space<vmem>>, vector<1x4x128xf32>
    %27 = vector.shape_cast %26 : vector<1x4x128xf32> to vector<4x128xf32>
    %c0_13 = arith.constant 0 : index
    %c0_14 = arith.constant 0 : index
    %c0_15 = arith.constant 0 : index
    %28 = vector.load %arg6[%c0_13, %c0_14, %c0_15] : memref<1x4x128xf32, #tpu.memory_space<vmem>>, vector<1x4x128xf32>
    %29 = vector.shape_cast %28 : vector<1x4x128xf32> to vector<4x128xf32>
    %30 = arith.subf %27, %29 : vector<4x128xf32>
    %31 = math.absf %30 : vector<4x128xf32>
    %cst_16 = arith.constant dense<0.000000e+00> : vector<4xf32>
    %32 = vector.multi_reduction <add>, %31, %cst_16 [1] : vector<4x128xf32> to vector<4xf32>
    %33 = vector.shape_cast %32 : vector<4xf32> to vector<4x1xf32>
    %cst_17 = arith.constant dense<0.000000e+00> : vector<1xf32>
    %34 = vector.multi_reduction <add>, %33, %cst_17 [0] : vector<4x1xf32> to vector<1xf32>
    %35 = vector.shape_cast %34 : vector<1xf32> to vector<1x1xf32>
    %c0_18 = arith.constant 0 : index
    %c0_19 = arith.constant 0 : index
    %c0_20 = arith.constant 0 : index
    %36 = vector.load %arg7[%c0_18, %c0_19, %c0_20] : memref<1x6x128xf32, #tpu.memory_space<vmem>>, vector<1x6x128xf32>
    %37 = vector.shape_cast %36 : vector<1x6x128xf32> to vector<6x128xf32>
    %c0_21 = arith.constant 0 : index
    %c0_22 = arith.constant 0 : index
    %c0_23 = arith.constant 0 : index
    %38 = vector.load %arg8[%c0_21, %c0_22, %c0_23] : memref<1x6x128xf32, #tpu.memory_space<vmem>>, vector<1x6x128xf32>
    %39 = vector.shape_cast %38 : vector<1x6x128xf32> to vector<6x128xf32>
    %40 = arith.subf %37, %39 : vector<6x128xf32>
    %41 = math.absf %40 : vector<6x128xf32>
    %cst_24 = arith.constant dense<0.000000e+00> : vector<6xf32>
    %42 = vector.multi_reduction <add>, %41, %cst_24 [1] : vector<6x128xf32> to vector<6xf32>
    %43 = vector.shape_cast %42 : vector<6xf32> to vector<6x1xf32>
    %cst_25 = arith.constant dense<0.000000e+00> : vector<1xf32>
    %44 = vector.multi_reduction <add>, %43, %cst_25 [0] : vector<6x1xf32> to vector<1xf32>
    %45 = vector.shape_cast %44 : vector<1xf32> to vector<1x1xf32>
    %c0_26 = arith.constant 0 : index
    %c0_27 = arith.constant 0 : index
    %46 = vector.load %arg10[%c0_26, %c0_27] : memref<1x1xf32, #tpu.memory_space<vmem>>, vector<1x1xf32>
    %cst_28 = arith.constant 0.001953125 : f32
    %47 = vector.broadcast %cst_28 : f32 to vector<1x1xf32>
    %48 = arith.mulf %25, %47 : vector<1x1xf32>
    %cst_29 = arith.constant 0.0048828125 : f32
    %49 = vector.broadcast %cst_29 : f32 to vector<1x1xf32>
    %50 = arith.mulf %35, %49 : vector<1x1xf32>
    %51 = arith.addf %48, %50 : vector<1x1xf32>
    %cst_30 = arith.constant 0.00130208337 : f32
    %52 = vector.broadcast %cst_30 : f32 to vector<1x1xf32>
    %53 = arith.mulf %45, %52 : vector<1x1xf32>
    %54 = arith.addf %51, %53 : vector<1x1xf32>
    %55 = arith.addf %46, %54 : vector<1x1xf32>
    %c0_31 = arith.constant 0 : index
    %c0_32 = arith.constant 0 : index
    %56 = vector.load %arg10[%c0_31, %c0_32] : memref<1x1xf32, #tpu.memory_space<vmem>>, vector<1x1xf32>
    tpu.vector_store %arg10[%c0_31, %c0_32], %55 {strides = array<i32>} : memref<1x1xf32, #tpu.memory_space<vmem>>, vector<1x1xf32>,
    %c0_i32_33 = arith.constant 0 : i32
    %57 = arith.cmpi eq, %arg2, %c0_i32_33 : i32
    %58 = arith.extui %57 : i1 to i32
    %c0_i32_34 = arith.constant 0 : i32
    %59 = arith.cmpi ne, %58, %c0_i32_34 : i32
    scf.if %59 {
      %c0_35 = arith.constant 0 : index
      %c0_36 = arith.constant 0 : index
      %60 = vector.load %arg10[%c0_35, %c0_36] : memref<1x1xf32, #tpu.memory_space<vmem>>, vector<1x1xf32>
      %61 = vector.shape_cast %60 : vector<1x1xf32> to vector<1x1x1xf32>
      %62 = vector.broadcast %61 : vector<1x1x1xf32> to vector<1x1x128xf32>
      %c0_37 = arith.constant 0 : index
      %c0_38 = arith.constant 0 : index
      %c0_39 = arith.constant 0 : index
      %63 = vector.load %arg9[%c0_37, %c0_38, %c0_39] : memref<1x1x128xf32, #tpu.memory_space<vmem>>, vector<1x1x128xf32>
      tpu.vector_store %arg9[%c0_37, %c0_38, %c0_39], %62 {strides = array<i32>} : memref<1x1x128xf32, #tpu.memory_space<vmem>>, vector<1x1x128xf32>,
    } else {
    }
    return
  }
  func.func @transform_0(%arg0: i32, %arg1: i32, %arg2: i32) -> (i32, i32, i32) {
    %c1_i32 = arith.constant 1 : i32
    %0 = arith.muli %arg0, %c1_i32 : i32
    %1 = arith.addi %0, %arg2 : i32
    %c0_i32 = arith.constant 0 : i32
    %c0_i32_0 = arith.constant 0 : i32
    return %arg1, %c0_i32, %1 : i32, i32, i32
  }
  func.func @transform_1(%arg0: i32, %arg1: i32, %arg2: i32) -> (i32, i32, i32) {
    %c1_i32 = arith.constant 1 : i32
    %0 = arith.muli %arg0, %c1_i32 : i32
    %1 = arith.addi %0, %arg2 : i32
    %c0_i32 = arith.constant 0 : i32
    %c0_i32_0 = arith.constant 0 : i32
    return %arg1, %c0_i32, %1 : i32, i32, i32
  }
  func.func @transform_2(%arg0: i32, %arg1: i32, %arg2: i32) -> (i32, i32, i32) {
    %c1_i32 = arith.constant 1 : i32
    %0 = arith.muli %arg0, %c1_i32 : i32
    %1 = arith.addi %0, %arg2 : i32
    %c0_i32 = arith.constant 0 : i32
    %c0_i32_0 = arith.constant 0 : i32
    return %arg1, %1, %c0_i32 : i32, i32, i32
  }
  func.func @transform_3(%arg0: i32, %arg1: i32, %arg2: i32) -> (i32, i32, i32) {
    %c1_i32 = arith.constant 1 : i32
    %0 = arith.muli %arg0, %c1_i32 : i32
    %1 = arith.addi %0, %arg2 : i32
    %c0_i32 = arith.constant 0 : i32
    %c0_i32_0 = arith.constant 0 : i32
    return %arg1, %1, %c0_i32 : i32, i32, i32
  }
  func.func @transform_4(%arg0: i32, %arg1: i32, %arg2: i32) -> (i32, i32, i32) {
    %c1_i32 = arith.constant 1 : i32
    %0 = arith.muli %arg0, %c1_i32 : i32
    %1 = arith.addi %0, %arg2 : i32
    %c0_i32 = arith.constant 0 : i32
    %c0_i32_0 = arith.constant 0 : i32
    return %arg1, %1, %c0_i32 : i32, i32, i32
  }
  func.func @transform_5(%arg0: i32, %arg1: i32, %arg2: i32) -> (i32, i32, i32) {
    %c1_i32 = arith.constant 1 : i32
    %0 = arith.muli %arg0, %c1_i32 : i32
    %1 = arith.addi %0, %arg2 : i32
    %c0_i32 = arith.constant 0 : i32
    %c0_i32_0 = arith.constant 0 : i32
    return %arg1, %1, %c0_i32 : i32, i32, i32
  }
  func.func @transform_6(%arg0: i32, %arg1: i32, %arg2: i32) -> (i32, i32, i32) {
    %c2_i32 = arith.constant 2 : i32
    %0 = arith.muli %arg0, %c2_i32 : i32
    %1 = arith.addi %0, %arg1 : i32
    %c0_i32 = arith.constant 0 : i32
    %c0_i32_0 = arith.constant 0 : i32
    %c0_i32_1 = arith.constant 0 : i32
    return %1, %c0_i32, %c0_i32_0 : i32, i32, i32
  }
}

</mosaic_0001>

<bundles_post_ra>
// kernel: tpu_custom_call.1
= control target key start
LH: loop header
LB: loop body
LE: loop exit
PB: predicated region body
PF: predicated region fallthrough
CT: control target
= control target key end

     0   :  { %s1112_s0 = inlined_call_operand.vmem [shape: f32[2,4,256], index: 0, kind: input, shape index: {}]   ;;  %s1113_s1 = inlined_call_operand.vmem [shape: s32[2,1,256], index: 1, kind: input, shape index: {}]   ;;  %s1114_s2 = inlined_call_operand.vmem [shape: f32[2,4,128], index: 2, kind: input, shape index: {}]   ;;  %s1115_s3 = inlined_call_operand.vmem [shape: f32[2,4,128], index: 3, kind: input, shape index: {}]   ;;  %s1116_s4 = inlined_call_operand.vmem [shape: f32[2,6,128], index: 4, kind: input, shape index: {}]   ;;  %s1117_s5 = inlined_call_operand.vmem [shape: f32[2,6,128], index: 5, kind: input, shape index: {}]   ;;  %s1118_s6 = inlined_call_operand.hbm [shape: f32[2,1,128], index: 6, kind: output, shape index: {}]  }
   0x1   :  { %1120 = sst [smem:[#allocation7_spill]] %s1114_s2 }
   0x2   :  { %11 = vsyncpa [#allocation4], 0 }
   0x3   :  { %13 = vsyncpa [#allocation4 + $0x1], 0  ;;  %s982_s21 = smov 0   ;;  %s984_s22 = smov 0  }
   0x4   :  { %s986_s23 = smov 0   ;;  %s988_s24 = smov 0  }
   0x5   :  { %s990_s25 = smov 0   ;;  %s992_s26 = smov 0  }
   0x6 LB: > { %s785_s27 = sadd.s32 4294967295, %s943_s26   ;;  %s786_s28 = sadd.s32 4294967294, %s943_s26   ;;  %s943_s26 = sphi %s992_s26, %s19_s26   ;;  %s939_s25 = sphi %s990_s25, %s1130_s25   ;;  %s935_s24 = sphi %s988_s24, %s1129_s24   ;;  %s931_s23 = sphi %s986_s23, %s1128_s23   ;;  %s927_s22 = sphi %s984_s22, %s1127_s22   ;;  %s923_s21 = sphi %s982_s21, %s1126_s21  }
   0x7   : > { %s34_s29 = sadd.s32 1, %s939_s25  ;;  %s229_s30 = sadd.s32 1, %s931_s23 }
   0x8   : > { %p36_p0 = scmp.ge.s32.totalorder %s34_s29, 2  ;;  %p239_p1 = scmp.ne.s32.totalorder %s931_s23, %s927_s22 }
   0x9   : > { %p240_p2 = scmp.eq.s32.totalorder %s785_s27, 1  ;;  %p245_p3 = scmp.ne.s32.totalorder %s927_s22, %s923_s21 }
   0xa   : > { %s1132_s29 = smov (%p36_p0, %s34_s29), 0  ;;  %p246_p5 = scmp.eq.s32.totalorder %s786_s28, 1 }
   0xb   : > { %1121 = sst [smem:[#allocation6_spill]] %s1132_s29  ;;  %p1022_p4 = por %p240_p2, %p239_p1 }
   0xc   : > { %s226_s8 = ssub.s32 %s939_s25, %s1132_s29  ;;  %p789_p6 = scmp.ge.s32.totalorder %s943_s26, 1 }
   0xd   : > { %p227_p7 = scmp.eq.s32.totalorder %s226_s8, 0  ;;  %p1029_p8 = por %p246_p5, %p245_p3 }
   0xe   : > { %p341_p9 = scmp.lt.s32.totalorder %s943_s26, 3 }
   0xf   : > { %s1035_s10 = scalar_select %p227_p7, %s931_s23, %s229_s30  }
  0x10   : > { %p342_p10 = pnand %p789_p6, %p341_p9 }
  0x11   : > { %p418_p11 = scmp.lt.s32.totalorder (!%p342_p10), %s935_s24, 1  ;;  %s1124_s2 = sld [smem:[#allocation7_spill]] (!%p342_p10) }
  0x12   : > { %345 = sbr.rel (%p342_p10) target bundleno = 356 (0x164), region = 44 }
  0x17   : > { %s1039_s11 = scalar_select %p418_p11, %s935_s24, 1  ;;  %vm491_vm0 = vcmask 1043456   ;;  %vm590_vm1 = vcmask 1045504   ;;  %v540_v32 = vlaneseq  ;;  %vm481_vm4 = vcmask 0  }
  0x19   : > { %s793_s12 = sshll.u32 %s1039_s11, 2  ;;  %s799_s19 = sshll.u32 %s1039_s11, 3  ;;  %v541_v38 = vshrl.u32 %v540_v32, 7 }
  0x1a   : > { %s446_s15 = scalar_lea.vmem %s1124_s2, %s793_s12  ;;  %s455_s18 = scalar_lea.vmem %s1115_s3, %s793_s12 }
  0x1b   : > { %v572_v0 = vld [vmem:[%s446_s15] sm:$0xf]  ;;  %s464_s28 = scalar_lea.vmem %s1116_s4, %s799_s19  ;;  %s473_s29 = scalar_lea.vmem %s1117_s5, %s799_s19 }
  0x1c   : > { %v573_v1 = vld [vmem:[%s455_s18] sm:$0xf]  ;;  %s425_s2 = scalar_lea.vmem %s1112_s0, %s799_s19  ;;  %s632_s18 = scalar_lea.hbm %s1118_s6, %s935_s24 }
  0x1d   : > { %v574_v2 = vsub.f32 %v572_v0, %v573_v1  ;;  %v586_v3 = vld [vmem:[%s464_s28] sm:$0x3f]  ;;  %s636_s27 = sshll.u32 %s632_s18, 4  ;;  %s885_s24 = scalar_lea.hbm %s1118_s6, 2  ;;  %s637_s27 = int_to_ptr.hbm [resolvable:$true] %s636_s27 }
  0x1e   : > { %v587_v4 = vld [vmem:[%s473_s29] sm:$0x3f]  ;;  %s879_s30 = sshra.s32 %s637_s27, 4  ;;  %s880_s30 = int_to_ptr.hbm [resolvable:$true] %s879_s30 }
  0x1f   : > { %v575_v5 = vand.u32 2147483647, %v574_v2  ;;  %v588_v6 = vsub.f32 %v586_v3, %v587_v4  ;;  %v483_v7 = vld [vmem:[%s425_s2] sm:$0xff]  ;;  %s792_s2 = sshll.u32 %s1039_s11, 1  ;;  %s414_s11 = sand.u32 1, %s927_s22  }
  0x20   : > { %486 = vst [vmem:[#allocation1] ss:$2 sm:$0xff] %v483_v7  ;;  %s436_s15 = scalar_lea.vmem %s1113_s1, %s792_s2  ;;  %s415_s19 = scalar_lea.vmem [#allocation3], %s414_s11 }
  0x21   : > { %v576_v8 = vsel %vm491_vm0, %v575_v5, 0.0  ;;  %v589_v9 = vand.u32 2147483647, %v588_v6  ;;  %v484_v33 = vld [vmem:[%s436_s15] sm:$0x3]  ;;  %s634_s20 = sshll.u32 %s415_s19, 4  ;;  %p886_p1 = scmp.lt.s32.totalorder %s880_s30, %s1118_s6  ;;  %s635_s20 = int_to_ptr.vmem [resolvable:$true] %s634_s20 }
  0x22   : > { %577 = vadd.xlane.f32.xlu0 %v576_v8  ;;  %v542_v41 = vperm.slane %v484_v33, 0  ;;  %v543_v42 = vperm.slane %v484_v33, 1  ;;  %s622_s28 = scalar_lea.sflag [#allocation4], %s414_s11  ;;  %s881_s8 = scalar_lea.hbm %s880_s30, 1 }
  0x23   : > { %v591_v10 = vsel %vm590_vm1, %v589_v9, 0.0  ;;  %p882_p12 = scmp.ne.s32.totalorder %s880_s30, %s881_s8  ;;  %p887_p2 = scmp.lt.s32.totalorder %s885_s24, %s881_s8 }
  0x24   : > { %vm544_vm2 = vcmp.eq.s32.totalorder %v541_v38, %v542_v41  ;;  %vm545_vm3 = vcmp.eq.s32.totalorder %v541_v38, %v543_v42 }
  0x25   : > { %p883_p13 = pnand %p882_p12, %p1022_p4  ;;  %p888_p3 = por %p887_p2, %p886_p1 }
  0x27   : > { %v487_v11 = vld.sshfl [vmem:[#allocation1] sm:$0xff pattern:$0x75316420]  ;;  %v488_v12 = vld.sshfl [vmem:[#allocation1 + $0x8] sm:$0xff pattern:$0x75316420]  ;;  %p884_p0 = pneg %p883_p13 }
  0x28   : > { %v492_v13 = vsel %vm491_vm0, %v487_v11, -inf  ;;  %v499_v14 = vsel %vm491_vm0, %v488_v12, -inf }
  0x29   : > { %v493_v15 = vrot.slane %v492_v13, 4  ;;  %v500_v16 = vrot.slane %v499_v14, 4  ;;  %p889_p5 = pnand %p888_p3, %p884_p0 }
  0x2a   : > { %592 = vadd.xlane.f32.xlu0 %v591_v10 }
  0x2b   : > { %v494_v17 = vmax.f32 %v492_v13, %v493_v15  ;;  %v501_v18 = vmax.f32 %v499_v14, %v500_v16  ;;  %v945_v16 = vmov 0.0  }
  0x2c   : > { %482 = vst.msk [vmem:[#allocation2] sm:$0x1] %vm481_vm4, %v945_v16 }
  0x2d   : > { %v495_v19 = vrot.slane %v494_v17, 2  ;;  %v502_v20 = vrot.slane %v501_v18, 2 }
  0x2f   : > { %v496_v21 = vmax.f32 %v494_v17, %v495_v19  ;;  %v503_v22 = vmax.f32 %v501_v18, %v502_v20 }
  0x31   : > { %v497_v23 = vrot.slane %v496_v21, 1  ;;  %v504_v24 = vrot.slane %v503_v22, 1 }
  0x33   : > { %v498_v25 = vmax.f32 %v496_v21, %v497_v23  ;;  %v505_v26 = vmax.f32 %v503_v22, %v504_v24  ;;  %v946_v22 = vmov 0  }
  0x34   : > { %857 = vset.pattern.permute.xlu1 %v946_v22  ;;  %858 = vset.pattern.permute.xlu0 %v946_v22 }
  0x35   : > { %v508_v27 = vrot.slane %v505_v26, 4 }
  0x37   : > { %v509_v28 = vsel %vm491_vm0, %v498_v25, %v508_v27 }
  0x38   : > { %v511_v29 = vsub.f32 %v483_v7, %v509_v28 }
  0x3a   : > { %v512_v30 = vmul.f32 1.442695, %v511_v29 }
  0x3c   : > { %859 = vpow2.f32 %v512_v30 }
  0x42   : > { %v860_v31 = vpop.eup %859 }
  0x43   : > { %515 = vst [vmem:[#allocation1] ss:$2 sm:$0xff] %v860_v31 }
  0x4a   : > { %v516_v34 = vld.sshfl [vmem:[#allocation1] sm:$0xff pattern:$0x75316420]  ;;  %v517_v35 = vld.sshfl [vmem:[#allocation1 + $0x8] sm:$0xff pattern:$0x75316420] }
  0x4b   : > { %v520_v36 = vsel %vm491_vm0, %v516_v34, 0.0  ;;  %v527_v37 = vsel %vm491_vm0, %v517_v35, 0.0  ;;  %546 = vst [vmem:[#allocation1] ss:$2 sm:$0xff] %v483_v7 }
  0x4c   : > { %v521_v39 = vrot.slane %v520_v36, 4  ;;  %v528_v40 = vrot.slane %v527_v37, 4 }
  0x4e   : > { %v522_v43 = vadd.f32 %v521_v39, %v520_v36  ;;  %v529_v44 = vadd.f32 %v528_v40, %v527_v37  ;;  %v601_v39 = vld [vmem:[#allocation2] sm:$0x1] }
  0x50   : > { %v523_v45 = vrot.slane %v522_v43, 2  ;;  %v530_v46 = vrot.slane %v529_v44, 2 }
  0x52   : > { %v524_v47 = vadd.f32 %v523_v45, %v522_v43  ;;  %v531_v48 = vadd.f32 %v530_v46, %v529_v44  ;;  %v547_v49 = vld.sshfl [vmem:[#allocation1] sm:$0xff pattern:$0x75316420]  ;;  %v548_v50 = vld.sshfl [vmem:[#allocation1 + $0x8] sm:$0xff pattern:$0x75316420] }
  0x53   : > { %v551_v51 = vsel %vm544_vm2, %v547_v49, 0.0  ;;  %v552_v52 = vsel %vm545_vm3, %v548_v50, 0.0 }
  0x54   : > { %v525_v53 = vrot.slane %v524_v47, 1  ;;  %v532_v54 = vrot.slane %v531_v48, 1  ;;  %v553_v55 = vsel %vm491_vm0, %v551_v51, 0.0  ;;  %v560_v56 = vsel %vm491_vm0, %v552_v52, 0.0 }
  0x55   : > { %v554_v57 = vrot.slane %v553_v55, 4  ;;  %v561_v58 = vrot.slane %v560_v56, 4 }
  0x56   : > { %v526_v59 = vadd.f32 %v525_v53, %v524_v47  ;;  %v533_v60 = vadd.f32 %v532_v54, %v531_v48 }
  0x57   : > { %v555_v61 = vadd.f32 %v554_v57, %v553_v55  ;;  %v562_v62 = vadd.f32 %v561_v58, %v560_v56 }
  0x58   : > { %861 = vlog2.f32 %v526_v59 }
  0x59   : > { %863 = vlog2.f32 %v533_v60  ;;  %v556_v63 = vrot.slane %v555_v61, 2  ;;  %v563_v0 = vrot.slane %v562_v62, 2 }
  0x5b   : > { %v557_v1 = vadd.f32 %v556_v63, %v555_v61  ;;  %v564_v2 = vadd.f32 %v563_v0, %v562_v62 }
  0x5d   : > { %v558_v3 = vrot.slane %v557_v1, 1  ;;  %v565_v4 = vrot.slane %v564_v2, 1 }
  0x5e   : > { %v862_v5 = vpop.eup %861 }
  0x5f   : > { %v864_v6 = vpop.eup %863  ;;  %v535_v7 = vmul.f32 0.6931472, %v862_v5  ;;  %v559_v8 = vadd.f32 %v558_v3, %v557_v1  ;;  %v566_v10 = vadd.f32 %v565_v4, %v564_v2 }
  0x60   : > { %v537_v9 = vmul.f32 0.6931472, %v864_v6 }
  0x61   : > { %v538_v11 = vadd.f32 %v535_v7, %v498_v25 }
  0x62   : > { %v539_v12 = vadd.f32 %v537_v9, %v505_v26 }
  0x63   : > { %v567_v13 = vsub.f32 %v538_v11, %v559_v8 }
  0x64   : > { %v568_v14 = vsub.f32 %v539_v12, %v566_v10 }
  0x66   : > { %v569_v15 = vadd.f32 %v568_v14, %v567_v13 }
  0x68   : > { %570 = vadd.xlane.f32.xlu1 %v569_v15 }
  0x95   : > { %v578_v17 = vpop.xlane.xlu0 %577 }
  0x96   : > { %v579_v19 = vsel %vm491_vm0, %v578_v17, 0.0 }
  0x97   : > { %v580_v21 = vrot.slane %v579_v19, 4 }
  0x99   : > { %v581_v24 = vadd.f32 %v580_v21, %v579_v19 }
  0x9b   : > { %v582_v26 = vrot.slane %v581_v24, 2 }
  0x9d   : > { %v593_v18 = vpop.xlane.xlu0 %592  ;;  %v583_v28 = vadd.f32 %v582_v26, %v581_v24 }
  0x9e   : > { %v594_v20 = vsel %vm590_vm1, %v593_v18, 0.0 }
  0x9f   : > { %v595_v23 = vrot.slane %v594_v20, 4  ;;  %v584_v30 = vrot.slane %v583_v28, 1 }
  0xa1   : > { %v596_v25 = vadd.f32 %v595_v23, %v594_v20  ;;  %v585_v32 = vadd.f32 %v584_v30, %v583_v28 }
  0xa3   : > { %v597_v27 = vrot.slane %v596_v25, 2  ;;  %v603_v35 = vmul.f32 0.0048828125, %v585_v32 }
  0xa5   : > { %v598_v29 = vadd.f32 %v597_v27, %v596_v25 }
  0xa7   : > { %v599_v31 = vrot.slane %v598_v29, 1 }
  0xa9   : > { %v600_v33 = vadd.f32 %v599_v31, %v598_v29 }
  0xab   : > { %v605_v37 = vmul.f32 0.0013020834, %v600_v33 }
  0xdb   : > { %v571_v34 = vpop.xlane.xlu1 %570 }
  0xdc   : > { %v602_v36 = vmul.f32 0.001953125, %v571_v34 }
  0xde   : > { %v604_v38 = vadd.f32 %v603_v35, %v602_v36 }
  0xe0   : > { %v606_v40 = vadd.f32 %v605_v37, %v604_v38 }
  0xe2   : > { %v607_v41 = vadd.f32 %v606_v40, %v601_v39 }
  0xe4   : > { %609 = vst.msk [vmem:[#allocation2] sm:$0x1] %vm481_vm4, %v607_v41 }
  0xeb   : > { %v613_v42 = vld [vmem:[#allocation2] sm:$0x1] }
  0xec   : > { %616 = vperm.xlu1 %857, %v613_v42  }
 0x15e   : > { %v617_v43 = vpop.permute.xlu1 %616 }
 0x15f   : > { %v619_v44 = vperm.slane %v617_v43, 0 }
 0x161   : > { %620 = vst [vmem:[%s415_s19] sm:$0x1] %v619_v44 }
 0x162   : > { %892 = shalt.err (!%p889_p5)
}
 0x163   : > { %800 = dma.vmem_to_hbm [thread:$0]  (%p1022_p4), %s635_s20, 16, %s637_s27, %s622_s28  }
 0x164 PF: > { %p806_p6 = scmp.ge.s32.totalorder %s943_s26, 2  ;;  %s648_s12 = sand.u32 1, %s923_s21  }
 0x165   : > { %s649_s15 = scalar_lea.sflag [#allocation4], %s648_s12 }
 0x166   : > { %p803_p7 = pnand %p806_p6, %p1029_p8 }
 0x168   : > { %p804_p9 = pneg %p803_p7 }
 0x16a   : > { %918 = dma.done.wait (%p804_p9), %s649_s15, 16  }
 0x16b   : > { %920 = vsyncadd (%p804_p9), %s649_s15, 4294967280  ;;  %s19_s26 = sadd.s32 1, %s943_s26   ;;  %s1125_s7 = sld [smem:[#allocation6_spill]] }
 0x16c   : > { %p16_p10 = scmp.ge.s32.totalorder %s19_s26, 4   ;;  %s1126_s21 = smov %s927_s22 }
 0x16d   : > { %s1127_s22 = smov %s931_s23  ;;  %s1128_s23 = smov %s1035_s10 }
 0x16e   : > { %s1129_s24 = smov %s939_s25  ;;  %18 = sbr.rel (!%p16_p10) target bundleno = 6 (0x6), region = 102 }
 0x171   : > { %s1130_s25 = smov %s1125_s7 }
 0x173   :  { %654 = vsyncpa [#allocation4], 1 }
 0x174   :  { %656 = vsyncpa [#allocation4 + $0x1], 1 }

</bundles_post_ra>
